<compile_context>
chip_gen: v7x
topology: tpu7x:2x2x1
jax: 0.10.0
libtpu: 0.0.40
codegen_flags: <defaults>
</compile_context>

<pallas_src>
import functools
import math

import jax
import jax.numpy as jnp
from jax import lax
from jax.experimental import pallas as pl
from jax.experimental.pallas import tpu as pltpu

_EPS = 1e-12  # F.normalize default eps


def _round_up(x, m):
    return ((x + m - 1) // m) * m


def _mem_kernel(x_ref, wt_ref, w_ref, y_ref, att_ref):
    """One row-tile of the memory unit.

    x_ref:   (tm, fea)     input rows
    wt_ref:  (fea, mem_p)  normalized memory matrix, transposed (resident, f32)
    w_ref:   (mem_p, fea)  raw memory matrix                    (resident, f32)
    y_ref:   (tm, fea)     output = att @ weight
    att_ref: (tm, mem_p)   att    = normalize(x) @ normalize(weight).T
    """
    x = x_ref[...].astype(jnp.float32)
    # F.normalize(x, dim=1): x / max(||x||, eps) == x * rsqrt(max(||x||^2, eps^2))
    sumsq = jnp.sum(x * x, axis=1, keepdims=True)
    xn = x * lax.rsqrt(jnp.maximum(sumsq, _EPS * _EPS))

    att = jnp.dot(xn, wt_ref[...], preferred_element_type=jnp.float32)  # MXU
    out = jnp.dot(att, w_ref[...], preferred_element_type=jnp.float32)  # MXU

    att_ref[...] = att.astype(att_ref.dtype)
    y_ref[...] = out.astype(y_ref.dtype)


@functools.partial(jax.jit, static_argnames=("tm",))
def memory_unit_pallas(x_flat, weight, *, tm=1024):
    """x_flat: (M, fea), weight: (mem, fea) -> (output (M, fea), att (M, mem))."""
    M, fea = x_flat.shape
    mem, fea_w = weight.shape
    assert fea == fea_w, "feature dim mismatch"

    # ---- hoisted weight work (done once, outside the grid) ------------------
    mem_p = _round_up(mem, 128)                 # lane-dense att output slab
    w32 = weight.astype(jnp.float32)
    if mem_p != mem:
        # zero rows normalize to zero -> padded att columns are exactly 0
        w32 = jnp.pad(w32, ((0, mem_p - mem), (0, 0)))
    w_sumsq = jnp.sum(w32 * w32, axis=1, keepdims=True)
    wn = w32 * lax.rsqrt(jnp.maximum(w_sumsq, _EPS * _EPS))
    wn_t = wn.T                                  # (fea, mem_p), precomputed once

    # ---- tile selection: VMEM-budget & megacore aware ------------------------
    itemsize = 4
    resident_bytes = 2 * 2 * mem_p * fea * itemsize       # double-buffered residents

    def tile_bytes(t):
        # double-buffered x tile + y tile + att tile + resident weight buffers
        return 2 * t * (2 * fea + mem_p) * itemsize + resident_bytes

    tm_sel = min(tm, _round_up(M, 8))
    tm_sel = max(8, _round_up(tm_sel, 8))
    if M >= 16:
        # keep at least 2 grid steps so the "parallel" axis can use both v7x TCs
        tm_sel = min(tm_sel, _round_up((M + 1) // 2, 8))
    while tm_sel > 8 and tile_bytes(tm_sel) > (40 << 20):
        tm_sel = max(8, _round_up(tm_sel // 2, 8))

    M_pad = _round_up(M, tm_sel)
    if M_pad != M:
        x_flat = jnp.pad(x_flat, ((0, M_pad - M), (0, 0)))
    grid = (M_pad // tm_sel,)

    # explicit scoped-VMEM limit (v5e default is only 16 MiB); stay under v7x 64 MiB
    vmem_limit = int(min(max(32 << 20, tile_bytes(tm_sel) + (8 << 20)), 56 << 20))

    cost = pl.CostEstimate(
        flops=int(4 * M_pad * mem_p * fea + 3 * M_pad * fea),
        transcendentals=int(M_pad),
        bytes_accessed=int((M_pad * (2 * fea + mem_p) + 2 * mem_p * fea) * itemsize),
    )

    out_shapes = (
        jax.ShapeDtypeStruct((M_pad, fea), x_flat.dtype),    # output
        jax.ShapeDtypeStruct((M_pad, mem_p), x_flat.dtype),  # att (lane-dense)
    )
    y, att = pl.pallas_call(
        _mem_kernel,
        out_shape=out_shapes,
        grid_spec=pltpu.PrefetchScalarGridSpec(
            num_scalar_prefetch=0,
            grid=grid,
            in_specs=[
                pl.BlockSpec((tm_sel, fea), lambda i: (i, 0)),
                pl.BlockSpec((fea, mem_p), lambda i: (0, 0)),   # resident wn_t
                pl.BlockSpec((mem_p, fea), lambda i: (0, 0)),   # resident weight
            ],
            out_specs=[
                pl.BlockSpec((tm_sel, fea), lambda i: (i, 0)),
                pl.BlockSpec((tm_sel, mem_p), lambda i: (i, 0)),
            ],
        ),
        compiler_params=pltpu.CompilerParams(
            dimension_semantics=("parallel",),
            vmem_limit_bytes=vmem_limit,
        ),
        cost_estimate=cost,
    )(x_flat, wn_t, w32)

    return y[:M], att[:M, :mem]


def mem_module_forward(x, weight, mem_dim):
    """Reproduces MemModule.forward for 3/4/5-D NC... inputs."""
    s = x.shape
    l = len(s)
    if l == 3:
        xp = jnp.transpose(x, (0, 2, 1))
    elif l == 4:
        xp = jnp.transpose(x, (0, 2, 3, 1))
    elif l == 5:
        xp = jnp.transpose(x, (0, 2, 3, 4, 1))
    else:
        raise ValueError("wrong feature map size")

    # exact PyTorch semantics: contiguous NHWC view flattened to (-1, s[2])
    x_flat = xp.reshape(-1, s[2])

    y_flat, att_flat = memory_unit_pallas(x_flat, weight)

    if l == 3:
        y = y_flat.reshape(s[0], s[2], s[1]).transpose(0, 2, 1)
        att = att_flat.reshape(s[0], s[1], mem_dim).transpose(0, 2, 1)
    elif l == 4:
        y = y_flat.reshape(s[0], s[2], s[3], s[1]).transpose(0, 3, 1, 2)
        att = att_flat.reshape(s[0], s[2], s[3], mem_dim).transpose(0, 3, 1, 2)
    else:  # l == 5
        y = y_flat.reshape(s[0], s[2], s[3], s[4], s[1]).transpose(0, 4, 1, 2, 3)
        att = att_flat.reshape(s[0], s[2], s[3], s[4], mem_dim).transpose(0, 4, 1, 2, 3)

    return {"output": y, "att": att}


if __name__ == "__main__":
    # Small shapes consistent with the module's flatten-with-s[2] convention:
    # N=2, C=16, H=16, W=16  (C == H == fea_dim, as required by the original code)
    N, C, H, W = 2, 16, 16, 16
    mem_dim = 32
    fea_dim = H  # x.view(-1, s[2]) means the memory feature dim is s[2]

    key = jax.random.PRNGKey(0)
    k_x, k_w = jax.random.split(key)

    x = jax.random.normal(k_x, (N, C, H, W), dtype=jnp.float32)

    # MemoryUnit.reset_parameters: uniform(-stdv, stdv), stdv = 1/sqrt(fea_dim)
    stdv = 1.0 / math.sqrt(fea_dim)
    weight = jax.random.uniform(
        k_w, (mem_dim, fea_dim), dtype=jnp.float32, minval=-stdv, maxval=stdv
    )

    result = mem_module_forward(x, weight, mem_dim)
    y = jax.block_until_ready(result["output"])
    att = jax.block_until_ready(result["att"])

    assert y.shape == (N, C, H, W)
    assert att.shape == (N, mem_dim, H, W)

    # Pure-JAX reference check of the kernel math (F.normalize semantics).
    x_flat = jnp.transpose(x, (0, 2, 3, 1)).reshape(-1, H)
    xn = x_flat / jnp.maximum(
        jnp.linalg.norm(x_flat, axis=1, keepdims=True), 1e-12
    )
    wn = weight / jnp.maximum(
        jnp.linalg.norm(weight, axis=1, keepdims=True), 1e-12
    )
    att_ref = xn @ wn.T
    y_ref = att_ref @ weight
    att_ref = att_ref.reshape(N, H, W, mem_dim).transpose(0, 3, 1, 2)
    y_ref = y_ref.reshape(N, H, W, C).transpose(0, 3, 1, 2)

    assert jnp.allclose(y, y_ref, atol=1e-5, rtol=1e-5)
    assert jnp.allclose(att, att_ref, atol=1e-5, rtol=1e-5)

    print("KERNEL_OK")
</pallas_src>

<mosaic_0001>
module attributes {stable_mosaic.version = 11 : i64} {
  func.func @_mem_kernel(%arg0: i32, %arg1: memref<256x16xf32, #tpu.memory_space<vmem>>, %arg2: memref<16x128xf32, #tpu.memory_space<vmem>>, %arg3: memref<128x16xf32, #tpu.memory_space<vmem>>, %arg4: memref<256x16xf32, #tpu.memory_space<vmem>>, %arg5: memref<256x128xf32, #tpu.memory_space<vmem>>) attributes {dimension_semantics = [#tpu.dimension_semantics<parallel>], iteration_bounds = array<i64: 2>, scalar_prefetch = 0 : i64, scratch_operands = 0 : i64, tpu.core_type = #tpu.core_type<tc>, window_params = [{transform_indices = @transform_0, window_bounds = array<i64: 256, 16>}, {pipeline_mode = #tpu.pipeline_mode<synchronous>, transform_indices = @transform_1, window_bounds = array<i64: 16, 128>}, {pipeline_mode = #tpu.pipeline_mode<synchronous>, transform_indices = @transform_2, window_bounds = array<i64: 128, 16>}, {transform_indices = @transform_3, window_bounds = array<i64: 256, 16>}, {transform_indices = @transform_4, window_bounds = array<i64: 256, 128>}]} {
    %c0 = arith.constant 0 : index
    %c0_0 = arith.constant 0 : index
    %0 = vector.load %arg1[%c0, %c0_0] : memref<256x16xf32, #tpu.memory_space<vmem>>, vector<256x16xf32>
    %1 = arith.mulf %0, %0 : vector<256x16xf32>
    %cst = arith.constant dense<0.000000e+00> : vector<256xf32>
    %2 = vector.multi_reduction <add>, %1, %cst [1] : vector<256x16xf32> to vector<256xf32>
    %3 = vector.shape_cast %2 : vector<256xf32> to vector<256x1xf32>
    %cst_1 = arith.constant 1.000000e-24 : f32
    %4 = vector.broadcast %cst_1 : f32 to vector<256x1xf32>
    %5 = arith.maximumf %3, %4 : vector<256x1xf32>
    %6 = math.rsqrt %5 : vector<256x1xf32>
    %7 = vector.broadcast %6 : vector<256x1xf32> to vector<256x16xf32>
    %8 = arith.mulf %0, %7 : vector<256x16xf32>
    %c0_2 = arith.constant 0 : index
    %c0_3 = arith.constant 0 : index
    %9 = vector.load %arg2[%c0_2, %c0_3] : memref<16x128xf32, #tpu.memory_space<vmem>>, vector<16x128xf32>
    %cst_4 = arith.constant dense<0.000000e+00> : vector<256x128xf32>
    %10 = tpu.matmul %8, %9, %cst_4 {dimension_numbers = #tpu.dot_dimension_numbers<[1], [0], [0], [1], [0, 0, 1, 1], [], []>} : vector<256x16xf32>, vector<16x128xf32>, vector<256x128xf32> -> vector<256x128xf32>
    %c0_5 = arith.constant 0 : index
    %c0_6 = arith.constant 0 : index
    %11 = vector.load %arg3[%c0_5, %c0_6] : memref<128x16xf32, #tpu.memory_space<vmem>>, vector<128x16xf32>
    %cst_7 = arith.constant dense<0.000000e+00> : vector<256x16xf32>
    %12 = tpu.matmul %10, %11, %cst_7 {dimension_numbers = #tpu.dot_dimension_numbers<[1], [0], [0], [1], [0, 0, 1, 1], [], []>} : vector<256x128xf32>, vector<128x16xf32>, vector<256x16xf32> -> vector<256x16xf32>
    %c0_8 = arith.constant 0 : index
    %c0_9 = arith.constant 0 : index
    %13 = vector.load %arg5[%c0_8, %c0_9] : memref<256x128xf32, #tpu.memory_space<vmem>>, vector<256x128xf32>
    tpu.vector_store %arg5[%c0_8, %c0_9], %10 {strides = array<i32>} : memref<256x128xf32, #tpu.memory_space<vmem>>, vector<256x128xf32>,
    %c0_10 = arith.constant 0 : index
    %c0_11 = arith.constant 0 : index
    %14 = vector.load %arg4[%c0_10, %c0_11] : memref<256x16xf32, #tpu.memory_space<vmem>>, vector<256x16xf32>
    tpu.vector_store %arg4[%c0_10, %c0_11], %12 {strides = array<i32>} : memref<256x16xf32, #tpu.memory_space<vmem>>, vector<256x16xf32>,
    return
  }
  func.func @transform_0(%arg0: i32) -> (i32, i32) {
    %c0_i32 = arith.constant 0 : i32
    %c0_i32_0 = arith.constant 0 : i32
    return %arg0, %c0_i32 : i32, i32
  }
  func.func @transform_1(%arg0: i32) -> (i32, i32) {
    %c0_i32 = arith.constant 0 : i32
    %c0_i32_0 = arith.constant 0 : i32
    %c0_i32_1 = arith.constant 0 : i32
    return %c0_i32, %c0_i32_0 : i32, i32
  }
  func.func @transform_2(%arg0: i32) -> (i32, i32) {
    %c0_i32 = arith.constant 0 : i32
    %c0_i32_0 = arith.constant 0 : i32
    %c0_i32_1 = arith.constant 0 : i32
    return %c0_i32, %c0_i32_0 : i32, i32
  }
  func.func @transform_3(%arg0: i32) -> (i32, i32) {
    %c0_i32 = arith.constant 0 : i32
    %c0_i32_0 = arith.constant 0 : i32
    return %arg0, %c0_i32 : i32, i32
  }
  func.func @transform_4(%arg0: i32) -> (i32, i32) {
    %c0_i32 = arith.constant 0 : i32
    %c0_i32_0 = arith.constant 0 : i32
    return %arg0, %c0_i32 : i32, i32
  }
}

</mosaic_0001>

<bundles_post_ra>
// kernel: memory_unit_pallas.1
= control target key start
LH: loop header
LB: loop body
LE: loop exit
PB: predicated region body
PF: predicated region fallthrough
CT: control target
= control target key end

     0   :  { %s1606_s15 = smov 0   ;;  %s2091_s0 = inlined_call_operand.vmem [shape: f32[512,16], index: 0, kind: input, shape index: {}]   ;;  %s2092_s1 = inlined_call_operand.vmem [shape: f32[16,128], index: 1, kind: input, shape index: {}]   ;;  %s2093_s2 = inlined_call_operand.vmem [shape: f32[128,16], index: 2, kind: input, shape index: {}]   ;;  %s2094_s3 = inlined_call_operand.vmem [shape: f32[512,16], index: 3, kind: output, shape index: {0}]   ;;  %s2095_s4 = inlined_call_operand.vmem [shape: f32[512,128], index: 4, kind: output, shape index: {1}]  }
   0x1 LB: > { %s1190_s16 = sadd.s32 4294967295, %s1579_s15   ;;  %p1194_p0 = scmp.ge.s32.totalorder %s1579_s15, 1  ;;  %s1579_s15 = sphi %s1606_s15, %s15_s15  }
   0x2   : > { %p166_p1 = scmp.lt.s32.totalorder %s1579_s15, 3 }
   0x4   : > { %p167_p2 = pnand %p1194_p0, %p166_p1 }
   0x5   : > { %s1195_s17 = sshll.u32 (!%p167_p2), %s1190_s16, 5  ;;  %vm279_vm0 = vcmask (!%p167_p2), 130048   ;;  %v472_v54 = vld [vmem:[%s2092_s1] sm:$0xff] (!%p167_p2)  ;;  %v473_v55 = vld [vmem:[%s2092_s1 + $0x8] sm:$0xff] (!%p167_p2) }
   0x6   : > { %170 = sbr.rel (%p167_p2) target bundleno = 669 (0x29d), region = 32  ;;  %p198_p3 = scmp.lt.s32.totalorder (!%p167_p2), %s1195_s17, 63  ;;  %v1449_v56 = vpack.c.bf16 (!%p167_p2), %v473_v55, %v472_v54  ;;  %v795_v55 = vld [vmem:[%s2093_s2] sm:$0xff] (!%p167_p2) }
   0x8   : > { %1450 = vmatprep.subr.bf16.mxu0 (!%p167_p2), %v1449_v56 }
   0x9   : > { %1452 = vmatpush3.bf16.msra.mxu0 (!%p167_p2), %v1449_v56  ;;  %v796_v56 = vld [vmem:[%s2093_s2 + $0x8] sm:$0xff] (!%p167_p2) }
   0xd   : > { %s2097_s17 = smov (!%p198_p3, %s1195_s17), 63 }
   0xe   : > { %s1614_s18 = sshll.u32 %s2097_s17, 3 }
   0xf   : > { %s1620_s21 = scalar_lea.vmem %s2091_s0, %s1614_s18  ;;  %s1984_s10 = scalar_lea.vmem %s2095_s4, %s1614_s18 }
  0x10   : > { %v1623_v0 = vld [vmem:[%s1620_s21] sm:$0xff]  ;;  %v1626_v1 = vld [vmem:[%s1620_s21 + $0x10] sm:$0xff]  ;;  %v1629_v2 = vld [vmem:[%s1620_s21 + $0x8] sm:$0xff]  ;;  %s2022_s13 = scalar_lea.vmem %s2094_s3, %s1614_s18 }
  0x11   : > { %v247_v3 = vmul.f32 %v1623_v0, %v1623_v0  ;;  %v249_v4 = vmul.f32 %v1626_v1, %v1626_v1  ;;  %v248_v5 = vmul.f32 %v1629_v2, %v1629_v2  ;;  %v1638_v6 = vld [vmem:[%s1620_s21 + $0x18] sm:$0xff]  ;;  %v1643_v8 = vld [vmem:[%s1620_s21 + $0x20] sm:$0xff]  ;;  %v1646_v9 = vld [vmem:[%s1620_s21 + $0x28] sm:$0xff] }
  0x12   : > { %v250_v7 = vmul.f32 %v1638_v6, %v1638_v6  ;;  %v251_v14 = vmul.f32 %v1643_v8, %v1643_v8  ;;  %v252_v15 = vmul.f32 %v1646_v9, %v1646_v9  ;;  %v1657_v16 = vld [vmem:[%s1620_s21 + $0x30] sm:$0xff]  ;;  %v1660_v17 = vld [vmem:[%s1620_s21 + $0x38] sm:$0xff]  ;;  %v1669_v22 = vld [vmem:[%s1620_s21 + $0x40] sm:$0xff] }
  0x13   : > { %v280_v10 = vsel %vm279_vm0, %v247_v3, 0.0  ;;  %v286_v11 = vsel %vm279_vm0, %v249_v4, 0.0  ;;  %v283_v12 = vsel %vm279_vm0, %v248_v5, 0.0  ;;  %v253_v20 = vmul.f32 %v1657_v16, %v1657_v16  ;;  %v1672_v23 = vld [vmem:[%s1620_s21 + $0x48] sm:$0xff]  ;;  %v1681_v28 = vld [vmem:[%s1620_s21 + $0x50] sm:$0xff]  ;;  %v1684_v29 = vld [vmem:[%s1620_s21 + $0x58] sm:$0xff] }
  0x14   : > { %281 = vadd.xlane.f32.xlu0 %v280_v10  ;;  %287 = vadd.xlane.f32.xlu1 %v286_v11  ;;  %v289_v13 = vsel %vm279_vm0, %v250_v7, 0.0  ;;  %v292_v18 = vsel %vm279_vm0, %v251_v14, 0.0  ;;  %v295_v19 = vsel %vm279_vm0, %v252_v15, 0.0  ;;  %v254_v21 = vmul.f32 %v1660_v17, %v1660_v17  ;;  %v1693_v34 = vld [vmem:[%s1620_s21 + $0x60] sm:$0xff]  ;;  %v1696_v35 = vld [vmem:[%s1620_s21 + $0x68] sm:$0xff]  ;;  %v1705_v40 = vld [vmem:[%s1620_s21 + $0x70] sm:$0xff] }
  0x15   : > { %v298_v24 = vsel %vm279_vm0, %v253_v20, 0.0  ;;  %v255_v26 = vmul.f32 %v1669_v22, %v1669_v22  ;;  %v256_v27 = vmul.f32 %v1672_v23, %v1672_v23  ;;  %v257_v32 = vmul.f32 %v1681_v28, %v1681_v28  ;;  %v1708_v41 = vld [vmem:[%s1620_s21 + $0x78] sm:$0xff]  ;;  %v1717_v46 = vld [vmem:[%s1620_s21 + $0x80] sm:$0xff]  ;;  %v1720_v47 = vld [vmem:[%s1620_s21 + $0x88] sm:$0xff] }
  0x16   : > { %v301_v25 = vsel %vm279_vm0, %v254_v21, 0.0  ;;  %v258_v33 = vmul.f32 %v1684_v29, %v1684_v29  ;;  %v259_v38 = vmul.f32 %v1693_v34, %v1693_v34  ;;  %v260_v39 = vmul.f32 %v1696_v35, %v1696_v35  ;;  %v1729_v52 = vld [vmem:[%s1620_s21 + $0x90] sm:$0xff]  ;;  %v1732_v53 = vld [vmem:[%s1620_s21 + $0x98] sm:$0xff]  ;;  %v1747_v61 = vld [vmem:[%s1620_s21 + $0xa0] sm:$0xff] }
  0x17   : > { %v304_v30 = vsel %vm279_vm0, %v255_v26, 0.0  ;;  %v307_v31 = vsel %vm279_vm0, %v256_v27, 0.0  ;;  %v310_v36 = vsel %vm279_vm0, %v257_v32, 0.0  ;;  %v261_v44 = vmul.f32 %v1705_v40, %v1705_v40  ;;  %v1750_v62 = vld [vmem:[%s1620_s21 + $0xa8] sm:$0xff]  ;;  %v1759_v7 = vld [vmem:[%s1620_s21 + $0xb0] sm:$0xff]  ;;  %v1762_v10 = vld [vmem:[%s1620_s21 + $0xb8] sm:$0xff] }
  0x18   : > { %284 = vadd.xlane.f32.xlu0 %v283_v12  ;;  %290 = vadd.xlane.f32.xlu1 %v289_v13  ;;  %v313_v37 = vsel %vm279_vm0, %v258_v33, 0.0  ;;  %v316_v42 = vsel %vm279_vm0, %v259_v38, 0.0  ;;  %v319_v43 = vsel %vm279_vm0, %v260_v39, 0.0  ;;  %v262_v45 = vmul.f32 %v1708_v41, %v1708_v41  ;;  %v1771_v15 = vld [vmem:[%s1620_s21 + $0xc0] sm:$0xff]  ;;  %v1786_v26 = vld [vmem:[%s1620_s21 + $0xd8] sm:$0xff] }
  0x19   : > { %v322_v48 = vsel %vm279_vm0, %v261_v44, 0.0  ;;  %v263_v50 = vmul.f32 %v1717_v46, %v1717_v46  ;;  %v264_v51 = vmul.f32 %v1720_v47, %v1720_v47  ;;  %v265_v59 = vmul.f32 %v1729_v52, %v1729_v52  ;;  %v1795_v33 = vld [vmem:[%s1620_s21 + $0xe0] sm:$0xff]  ;;  %v1810_v44 = vld [vmem:[%s1620_s21 + $0xf8] sm:$0xff] }
  0x1a   : > { %v325_v49 = vsel %vm279_vm0, %v262_v45, 0.0  ;;  %v266_v60 = vmul.f32 %v1732_v53, %v1732_v53  ;;  %v267_v4 = vmul.f32 %v1747_v61, %v1747_v61  ;;  %v268_v5 = vmul.f32 %v1750_v62, %v1750_v62 }
  0x1b   : > { %v328_v57 = vsel %vm279_vm0, %v263_v50, 0.0  ;;  %v331_v58 = vsel %vm279_vm0, %v264_v51, 0.0  ;;  %v334_v63 = vsel %vm279_vm0, %v265_v59, 0.0  ;;  %v269_v13 = vmul.f32 %v1759_v7, %v1759_v7  ;;  %v798_v59 = vld [vmem:[%s2093_s2 + $0x18] sm:$0xff] }
  0x1c   : > { %293 = vadd.xlane.f32.xlu0 %v292_v18  ;;  %296 = vadd.xlane.f32.xlu1 %v295_v19  ;;  %v337_v3 = vsel %vm279_vm0, %v266_v60, 0.0  ;;  %v340_v11 = vsel %vm279_vm0, %v267_v4, 0.0  ;;  %v343_v12 = vsel %vm279_vm0, %v268_v5, 0.0  ;;  %v270_v14 = vmul.f32 %v1762_v10, %v1762_v10  ;;  %v1774_v18 = vld [vmem:[%s1620_s21 + $0xc8] sm:$0xff]  ;;  %v801_v5 = vld [vmem:[%s2093_s2 + $0x30] sm:$0xff] }
  0x1d   : > { %v346_v19 = vsel %vm279_vm0, %v269_v13, 0.0  ;;  %v271_v21 = vmul.f32 %v1771_v15, %v1771_v15  ;;  %v274_v32 = vmul.f32 %v1786_v26, %v1786_v26  ;;  %v275_v39 = vmul.f32 %v1795_v33, %v1795_v33  ;;  %v803_v13 = vld [vmem:[%s2093_s2 + $0x40] sm:$0xff] }
  0x1e   : > { %v349_v20 = vsel %vm279_vm0, %v270_v14, 0.0  ;;  %v278_v50 = vmul.f32 %v1810_v44, %v1810_v44  ;;  %v804_v14 = vld [vmem:[%s2093_s2 + $0x48] sm:$0xff] }
  0x1f   : > { %v352_v27 = vsel %vm279_vm0, %v271_v21, 0.0  ;;  %v361_v38 = vsel %vm279_vm0, %v274_v32, 0.0  ;;  %v364_v45 = vsel %vm279_vm0, %v275_v39, 0.0  ;;  %v806_v21 = vld [vmem:[%s2093_s2 + $0x58] sm:$0xff]  ;;  %v809_v32 = vld [vmem:[%s2093_s2 + $0x70] sm:$0xff] }
  0x20   : > { %299 = vadd.xlane.f32.xlu0 %v298_v24  ;;  %302 = vadd.xlane.f32.xlu1 %v301_v25  ;;  %v272_v24 = vmul.f32 %v1774_v18, %v1774_v18  ;;  %v1783_v25 = vld [vmem:[%s1620_s21 + $0xd0] sm:$0xff]  ;;  %v373_v54 = vsel %vm279_vm0, %v278_v50, 0.0 }
  0x24   : > { %305 = vadd.xlane.f32.xlu0 %v304_v30  ;;  %308 = vadd.xlane.f32.xlu1 %v307_v31  ;;  %v355_v30 = vsel %vm279_vm0, %v272_v24, 0.0  ;;  %v273_v31 = vmul.f32 %v1783_v25, %v1783_v25 }
  0x28   : > { %311 = vadd.xlane.f32.xlu0 %v310_v36  ;;  %314 = vadd.xlane.f32.xlu1 %v313_v37  ;;  %v1798_v36 = vld [vmem:[%s1620_s21 + $0xe8] sm:$0xff]  ;;  %v358_v37 = vsel %vm279_vm0, %v273_v31, 0.0 }
  0x2c   : > { %317 = vadd.xlane.f32.xlu0 %v316_v42  ;;  %320 = vadd.xlane.f32.xlu1 %v319_v43  ;;  %v276_v42 = vmul.f32 %v1798_v36, %v1798_v36  ;;  %v1807_v43 = vld [vmem:[%s1620_s21 + $0xf0] sm:$0xff] }
  0x30   : > { %323 = vadd.xlane.f32.xlu0 %v322_v48  ;;  %326 = vadd.xlane.f32.xlu1 %v325_v49  ;;  %v367_v48 = vsel %vm279_vm0, %v276_v42, 0.0  ;;  %v277_v49 = vmul.f32 %v1807_v43, %v1807_v43 }
  0x32   : > { %v370_v51 = vsel %vm279_vm0, %v277_v49, 0.0 }
  0x34   : > { %329 = vadd.xlane.f32.xlu0 %v328_v57  ;;  %332 = vadd.xlane.f32.xlu1 %v331_v58  ;;  %v797_v57 = vld [vmem:[%s2093_s2 + $0x10] sm:$0xff]  ;;  %v1829_v58 = vpack.c.bf16 %v796_v56, %v795_v55 }
  0x35   : > { %v1835_v60 = vpack.c.bf16 %v798_v59, %v797_v57 }
  0x36   : > { %1454 = vmatprep.subr.bf16.mxu0 %v1829_v58  ;;  %1485 = vmatprep.subr.bf16.mxu1 %v1829_v58 }
  0x37   : > { %1493 = vmatpush3.bf16.msra.mxu1 %v1829_v58 }
  0x38   : > { %335 = vadd.xlane.f32.xlu0 %v334_v63  ;;  %338 = vadd.xlane.f32.xlu1 %v337_v3  ;;  %v799_v63 = vld [vmem:[%s2093_s2 + $0x20] sm:$0xff]  ;;  %v800_v3 = vld [vmem:[%s2093_s2 + $0x28] sm:$0xff] }
  0x39   : > { %1486 = vmatprep.subr.bf16.mxu1 %v1835_v60  ;;  %v1846_v4 = vpack.c.bf16 %v800_v3, %v799_v63 }
  0x3b   : > { %1494 = vmatpush3.bf16.msra.mxu1 %v1835_v60 }
  0x3c   : > { %341 = vadd.xlane.f32.xlu0 %v340_v11  ;;  %344 = vadd.xlane.f32.xlu1 %v343_v12  ;;  %v802_v11 = vld [vmem:[%s2093_s2 + $0x38] sm:$0xff] }
  0x3d   : > { %1487 = vmatprep.subr.bf16.mxu1 %v1846_v4  ;;  %v1856_v12 = vpack.c.bf16 %v802_v11, %v801_v5 }
  0x3f   : > { %1495 = vmatpush3.bf16.msra.mxu1 %v1846_v4 }
  0x40   : > { %347 = vadd.xlane.f32.xlu0 %v346_v19  ;;  %350 = vadd.xlane.f32.xlu1 %v349_v20  ;;  %v1866_v19 = vpack.c.bf16 %v804_v14, %v803_v13  ;;  %v805_v20 = vld [vmem:[%s2093_s2 + $0x50] sm:$0xff] }
  0x41   : > { %1488 = vmatprep.subr.bf16.mxu1 %v1856_v12  ;;  %v1876_v24 = vpack.c.bf16 %v806_v21, %v805_v20 }
  0x43   : > { %1496 = vmatpush3.bf16.msra.mxu1 %v1856_v12 }
  0x44   : > { %353 = vadd.xlane.f32.xlu0 %v352_v27  ;;  %356 = vadd.xlane.f32.xlu1 %v355_v30  ;;  %v807_v27 = vld [vmem:[%s2093_s2 + $0x60] sm:$0xff]  ;;  %v808_v30 = vld [vmem:[%s2093_s2 + $0x68] sm:$0xff] }
  0x45   : > { %1489 = vmatprep.subr.bf16.mxu1 %v1866_v19  ;;  %v1886_v31 = vpack.c.bf16 %v808_v30, %v807_v27 }
  0x47   : > { %1497 = vmatpush3.bf16.msra.mxu1 %v1866_v19 }
  0x48   : > { %359 = vadd.xlane.f32.xlu0 %v358_v37  ;;  %362 = vadd.xlane.f32.xlu1 %v361_v38  ;;  %v810_v37 = vld [vmem:[%s2093_s2 + $0x78] sm:$0xff] }
  0x49   : > { %1490 = vmatprep.subr.bf16.mxu1 %v1876_v24  ;;  %v1896_v38 = vpack.c.bf16 %v810_v37, %v809_v32 }
  0x4b   : > { %1498 = vmatpush3.bf16.msra.mxu1 %v1876_v24 }
  0x4c   : > { %365 = vadd.xlane.f32.xlu0 %v364_v45  ;;  %368 = vadd.xlane.f32.xlu1 %v367_v48 }
  0x4d   : > { %1491 = vmatprep.subr.bf16.mxu1 %v1886_v31 }
  0x4f   : > { %1499 = vmatpush3.bf16.msra.mxu1 %v1886_v31 }
  0x50   : > { %371 = vadd.xlane.f32.xlu0 %v370_v51  ;;  %374 = vadd.xlane.f32.xlu1 %v373_v54 }
  0x51   : > { %1492 = vmatprep.subr.bf16.mxu1 %v1896_v38 }
  0x53   : > { %1500 = vmatpush3.bf16.msra.mxu1 %v1896_v38 }
  0xa1   : > { %v282_v39 = vpop.xlane.xlu0 %281  ;;  %v288_v42 = vpop.xlane.xlu1 %287 }
  0xa2   : > { %v376_v45 = vmax.f32 %v282_v39, 1e-24  ;;  %v378_v48 = vmax.f32 %v288_v42, 1e-24 }
  0xa4   : > { %1509 = vrsqrt.f32 %v376_v45 }
  0xa5   : > { %1511 = vrsqrt.f32 %v378_v48  ;;  %v285_v49 = vpop.xlane.xlu0 %284  ;;  %v291_v50 = vpop.xlane.xlu1 %290 }
  0xa6   : > { %v377_v51 = vmax.f32 %v285_v49, 1e-24  ;;  %v379_v54 = vmax.f32 %v291_v50, 1e-24 }
  0xa8   : > { %1513 = vrsqrt.f32 %v377_v51 }
  0xa9   : > { %1515 = vrsqrt.f32 %v379_v54  ;;  %v294_v55 = vpop.xlane.xlu0 %293  ;;  %v297_v56 = vpop.xlane.xlu1 %296 }
  0xaa   : > { %v380_v57 = vmax.f32 %v294_v55, 1e-24  ;;  %v381_v59 = vmax.f32 %v297_v56, 1e-24 }
  0xac   : > { %1517 = vrsqrt.f32 %v380_v57 }
  0xad   : > { %1519 = vrsqrt.f32 %v381_v59  ;;  %v300_v63 = vpop.xlane.xlu0 %299  ;;  %v303_v3 = vpop.xlane.xlu1 %302 }
  0xae   : > { %v1510_v5 = vpop.eup %1509  ;;  %v382_v11 = vmax.f32 %v300_v63, 1e-24  ;;  %v383_v13 = vmax.f32 %v303_v3, 1e-24 }
  0xaf   : > { %v1512_v14 = vpop.eup %1511  ;;  %v440_v20 = vmul.f32 %v1510_v5, %v1623_v0 }
  0xb0   : > { %1521 = vrsqrt.f32 %v382_v11  ;;  %v442_v39 = vmul.f32 %v1512_v14, %v1626_v1 }
  0xb1   : > { %1523 = vrsqrt.f32 %v383_v13  ;;  %1321 = vmatprep.mubr.msk.f32.mxu0 %vm279_vm0, %v440_v20  ;;  %v306_v21 = vpop.xlane.xlu0 %305  ;;  %v309_v27 = vpop.xlane.xlu1 %308 }
  0xb2   : > { %v1514_v30 = vpop.eup %1513  ;;  %v384_v32 = vmax.f32 %v306_v21, 1e-24  ;;  %v385_v37 = vmax.f32 %v309_v27, 1e-24 }
  0xb3   : > { %v1516_v42 = vpop.eup %1515  ;;  %v441_v45 = vmul.f32 %v1514_v30, %v1629_v2 }
  0xb4   : > { %1525 = vrsqrt.f32 %v384_v32  ;;  %v443_v49 = vmul.f32 %v1516_v42, %v1638_v6 }
  0xb5   : > { %1527 = vrsqrt.f32 %v385_v37  ;;  %1322 = vmatmul.mubr.msk.f32.vlgmr.msra.gmra.mrb[0].mxu0 %vm279_vm0, %v441_v45  ;;  %v312_v48 = vpop.xlane.xlu0 %311  ;;  %v315_v0 = vpop.xlane.xlu1 %314 }
  0xb6   : > { %v1518_v50 = vpop.eup %1517  ;;  %1324 = vmatprep.mubr.msk.f32.mxu0 %vm279_vm0, %v442_v39  ;;  %v386_v51 = vmax.f32 %v312_v48, 1e-24  ;;  %v387_v54 = vmax.f32 %v315_v0, 1e-24  ;;  %1456 = vmatpush3.bf16.msra.mxu0 %v1829_v58 }
  0xb7   : > { %v1520_v55 = vpop.eup %1519  ;;  %v444_v1 = vmul.f32 %v1518_v50, %v1643_v8  ;;  %1458 = vmatprep.subr.bf16.mxu0 %v1835_v60 }
  0xb8   : > { %1529 = vrsqrt.f32 %v386_v51  ;;  %v445_v6 = vmul.f32 %v1520_v55, %v1646_v9 }
  0xb9   : > { %1531 = vrsqrt.f32 %v387_v54  ;;  %1325 = vmatmul.mubr.msk.f32.gmra.mrb[2].mxu0 %vm279_vm0, %v443_v49  ;;  %v318_v2 = vpop.xlane.xlu0 %317  ;;  %v321_v56 = vpop.xlane.xlu1 %320 }
  0xba   : > { %v1522_v57 = vpop.eup %1521  ;;  %1327 = vmatprep.mubr.msk.f32.mxu0 %vm279_vm0, %v444_v1  ;;  %v388_v59 = vmax.f32 %v318_v2, 1e-24  ;;  %v389_v63 = vmax.f32 %v321_v56, 1e-24  ;;  %1460 = vmatpush3.bf16.msra.mxu0 %v1835_v60 }
  0xbb   : > { %v1524_v58 = vpop.eup %1523  ;;  %v446_v8 = vmul.f32 %v1522_v57, %v1657_v16  ;;  %1462 = vmatprep.subr.bf16.mxu0 %v1846_v4 }
  0xbc   : > { %1533 = vrsqrt.f32 %v388_v59  ;;  %v447_v9 = vmul.f32 %v1524_v58, %v1660_v17 }
  0xbd   : > { %1535 = vrsqrt.f32 %v389_v63  ;;  %1328 = vmatmul.mubr.msk.f32.gmra.mrb[4].mxu0 %vm279_vm0, %v445_v6  ;;  %v324_v3 = vpop.xlane.xlu0 %323  ;;  %v327_v5 = vpop.xlane.xlu1 %326 }
  0xbe   : > { %v1526_v11 = vpop.eup %1525  ;;  %1330 = vmatprep.mubr.msk.f32.mxu0 %vm279_vm0, %v446_v8  ;;  %v390_v13 = vmax.f32 %v324_v3, 1e-24  ;;  %v391_v14 = vmax.f32 %v327_v5, 1e-24  ;;  %1464 = vmatpush3.bf16.msra.mxu0 %v1846_v4 }
  0xbf   : > { %v1528_v60 = vpop.eup %1527  ;;  %v448_v16 = vmul.f32 %v1526_v11, %v1669_v22  ;;  %1466 = vmatprep.subr.bf16.mxu0 %v1856_v12 }
  0xc0   : > { %1537 = vrsqrt.f32 %v390_v13  ;;  %v449_v17 = vmul.f32 %v1528_v60, %v1672_v23 }
  0xc1   : > { %1539 = vrsqrt.f32 %v391_v14  ;;  %1331 = vmatmul.mubr.msk.f32.gmra.mrb[6].mxu0 %vm279_vm0, %v447_v9  ;;  %v330_v20 = vpop.xlane.xlu0 %329  ;;  %v333_v21 = vpop.xlane.xlu1 %332 }
  0xc2   : > { %v1530_v27 = vpop.eup %1529  ;;  %1333 = vmatprep.mubr.msk.f32.mxu0 %vm279_vm0, %v448_v16  ;;  %v392_v30 = vmax.f32 %v330_v20, 1e-24  ;;  %v393_v32 = vmax.f32 %v333_v21, 1e-24  ;;  %1468 = vmatpush3.bf16.msra.mxu0 %v1856_v12 }
  0xc3   : > { %v1532_v4 = vpop.eup %1531  ;;  %v450_v22 = vmul.f32 %v1530_v27, %v1681_v28  ;;  %1470 = vmatprep.subr.bf16.mxu0 %v1866_v19 }
  0xc4   : > { %1541 = vrsqrt.f32 %v392_v30  ;;  %v451_v23 = vmul.f32 %v1532_v4, %v1684_v29 }
  0xc5   : > { %1543 = vrsqrt.f32 %v393_v32  ;;  %1334 = vmatmul.mubr.msk.f32.gmra.mrb[8].mxu0 %vm279_vm0, %v449_v17  ;;  %v336_v37 = vpop.xlane.xlu0 %335  ;;  %v339_v39 = vpop.xlane.xlu1 %338 }
  0xc6   : > { %v1534_v42 = vpop.eup %1533  ;;  %1336 = vmatprep.mubr.msk.f32.mxu0 %vm279_vm0, %v450_v22  ;;  %v394_v45 = vmax.f32 %v336_v37, 1e-24  ;;  %v395_v48 = vmax.f32 %v339_v39, 1e-24  ;;  %1472 = vmatpush3.bf16.msra.mxu0 %v1866_v19 }
  0xc7   : > { %v1536_v12 = vpop.eup %1535  ;;  %v452_v28 = vmul.f32 %v1534_v42, %v1693_v34  ;;  %1474 = vmatprep.subr.bf16.mxu0 %v1876_v24 }
  0xc8   : > { %1545 = vrsqrt.f32 %v394_v45  ;;  %v453_v29 = vmul.f32 %v1536_v12, %v1696_v35 }
  0xc9   : > { %1547 = vrsqrt.f32 %v395_v48  ;;  %1337 = vmatmul.mubr.msk.f32.gmra.mrb[10].mxu0 %vm279_vm0, %v451_v23  ;;  %v342_v0 = vpop.xlane.xlu0 %341  ;;  %v345_v49 = vpop.xlane.xlu1 %344 }
  0xca   : > { %v1538_v50 = vpop.eup %1537  ;;  %1339 = vmatprep.mubr.msk.f32.mxu0 %vm279_vm0, %v452_v28  ;;  %v396_v51 = vmax.f32 %v342_v0, 1e-24  ;;  %v397_v54 = vmax.f32 %v345_v49, 1e-24  ;;  %1476 = vmatpush3.bf16.msra.mxu0 %v1876_v24 }
  0xcb   : > { %v1540_v19 = vpop.eup %1539  ;;  %v454_v34 = vmul.f32 %v1538_v50, %v1705_v40  ;;  %1478 = vmatprep.subr.bf16.mxu0 %v1886_v31 }
  0xcc   : > { %1549 = vrsqrt.f32 %v396_v51  ;;  %v455_v35 = vmul.f32 %v1540_v19, %v1708_v41 }
  0xcd   : > { %1551 = vrsqrt.f32 %v397_v54  ;;  %1340 = vmatmul.mubr.msk.f32.gmra.mrb[12].mxu0 %vm279_vm0, %v453_v29  ;;  %v348_v55 = vpop.xlane.xlu0 %347  ;;  %v351_v1 = vpop.xlane.xlu1 %350 }
  0xce   : > { %v1542_v2 = vpop.eup %1541  ;;  %1342 = vmatprep.mubr.msk.f32.mxu0 %vm279_vm0, %v454_v34  ;;  %v398_v56 = vmax.f32 %v348_v55, 1e-24  ;;  %v399_v6 = vmax.f32 %v351_v1, 1e-24  ;;  %1480 = vmatpush3.bf16.msra.mxu0 %v1886_v31 }
  0xcf   : > { %v1544_v24 = vpop.eup %1543  ;;  %v456_v40 = vmul.f32 %v1542_v2, %v1717_v46  ;;  %1482 = vmatprep.subr.bf16.mxu0 %v1896_v38 }
  0xd0   : > { %1553 = vrsqrt.f32 %v398_v56  ;;  %v457_v41 = vmul.f32 %v1544_v24, %v1720_v47 }
  0xd1   : > { %1555 = vrsqrt.f32 %v399_v6  ;;  %1343 = vmatmul.mubr.msk.f32.gmra.mrb[14].mxu0 %vm279_vm0, %v455_v35  ;;  %v354_v57 = vpop.xlane.xlu0 %353  ;;  %v357_v59 = vpop.xlane.xlu1 %356 }
  0xd2   : > { %v1546_v63 = vpop.eup %1545  ;;  %1345 = vmatprep.mubr.msk.f32.mxu0 %vm279_vm0, %v456_v40  ;;  %v400_v58 = vmax.f32 %v354_v57, 1e-24  ;;  %v401_v8 = vmax.f32 %v357_v59, 1e-24  ;;  %1484 = vmatpush3.bf16.msra.mxu0 %v1896_v38 }
  0xd3   : > { %v1548_v31 = vpop.eup %1547  ;;  %v458_v46 = vmul.f32 %v1546_v63, %v1729_v52 }
  0xd4   : > { %1557 = vrsqrt.f32 %v400_v58  ;;  %v459_v9 = vmul.f32 %v1548_v31, %v1732_v53 }
  0xd5   : > { %1559 = vrsqrt.f32 %v401_v8  ;;  %1346 = vmatmul.mubr.msk.f32.gmra.mrb[16].mxu0 %vm279_vm0, %v457_v41  ;;  %v360_v3 = vpop.xlane.xlu0 %359  ;;  %v363_v5 = vpop.xlane.xlu1 %362 }
  0xd6   : > { %v1550_v11 = vpop.eup %1549  ;;  %1348 = vmatprep.mubr.msk.f32.mxu0 %vm279_vm0, %v458_v46  ;;  %v402_v47 = vmax.f32 %v360_v3, 1e-24  ;;  %v403_v13 = vmax.f32 %v363_v5, 1e-24 }
  0xd7   : > { %v1552_v14 = vpop.eup %1551  ;;  %v460_v60 = vmul.f32 %v1550_v11, %v1747_v61 }
  0xd8   : > { %1561 = vrsqrt.f32 %v402_v47  ;;  %v461_v16 = vmul.f32 %v1552_v14, %v1750_v62 }
  0xd9   : > { %1563 = vrsqrt.f32 %v403_v13  ;;  %1349 = vmatmul.mubr.msk.f32.gmra.mrb[18].mxu0 %vm279_vm0, %v459_v9  ;;  %v366_v52 = vpop.xlane.xlu0 %365  ;;  %v369_v38 = vpop.xlane.xlu1 %368 }
  0xda   : > { %v1554_v20 = vpop.eup %1553  ;;  %1351 = vmatprep.mubr.msk.f32.mxu0 %vm279_vm0, %v460_v60  ;;  %v404_v53 = vmax.f32 %v366_v52, 1e-24  ;;  %v405_v21 = vmax.f32 %v369_v38, 1e-24 }
  0xdb   : > { %v1556_v17 = vpop.eup %1555  ;;  %v462_v27 = vmul.f32 %v1554_v20, %v1759_v7 }
  0xdc   : > { %1565 = vrsqrt.f32 %v404_v53  ;;  %v463_v32 = vmul.f32 %v1556_v17, %v1762_v10 }
  0xdd   : > { %1567 = vrsqrt.f32 %v405_v21  ;;  %1352 = vmatmul.mubr.msk.f32.gmra.mrb[20].mxu0 %vm279_vm0, %v461_v16  ;;  %v372_v61 = vpop.xlane.xlu0 %371  ;;  %v375_v30 = vpop.xlane.xlu1 %374 }
  0xde   : > { %v1558_v4 = vpop.eup %1557  ;;  %1354 = vmatprep.mubr.msk.f32.mxu0 %vm279_vm0, %v462_v27  ;;  %v406_v62 = vmax.f32 %v372_v61, 1e-24  ;;  %v407_v22 = vmax.f32 %v375_v30, 1e-24 }
  0xdf   : > { %v1560_v37 = vpop.eup %1559  ;;  %v464_v39 = vmul.f32 %v1558_v4, %v1771_v15 }
  0xe0   : > { %1569 = vrsqrt.f32 %v406_v62  ;;  %v465_v7 = vmul.f32 %v1560_v37, %v1774_v18 }
  0xe1   : > { %1571 = vrsqrt.f32 %v407_v22  ;;  %1355 = vmatmul.mubr.msk.f32.gmra.mrb[22].mxu0 %vm279_vm0, %v463_v32 }
  0xe2   : > { %v1562_v23 = vpop.eup %1561  ;;  %1357 = vmatprep.mubr.msk.f32.mxu0 %vm279_vm0, %v464_v39 }
  0xe3   : > { %v1564_v42 = vpop.eup %1563  ;;  %v466_v10 = vmul.f32 %v1562_v23, %v1783_v25 }
  0xe4   : > { %v467_v45 = vmul.f32 %v1564_v42, %v1786_v26 }
  0xe5   : > { %1358 = vmatmul.mubr.msk.f32.gmra.mrb[24].mxu0 %vm279_vm0, %v465_v7 }
  0xe6   : > { %v1566_v48 = vpop.eup %1565  ;;  %1360 = vmatprep.mubr.msk.f32.mxu0 %vm279_vm0, %v466_v10 }
  0xe7   : > { %v1568_v15 = vpop.eup %1567  ;;  %v468_v12 = vmul.f32 %v1566_v48, %v1795_v33 }
  0xe8   : > { %v469_v18 = vmul.f32 %v1568_v15, %v1798_v36 }
  0xe9   : > { %1361 = vmatmul.mubr.msk.f32.gmra.mrb[26].mxu0 %vm279_vm0, %v467_v45 }
  0xea   : > { %v1570_v28 = vpop.eup %1569  ;;  %1363 = vmatprep.mubr.msk.f32.mxu0 %vm279_vm0, %v468_v12 }
  0xeb   : > { %v1572_v0 = vpop.eup %1571  ;;  %v470_v25 = vmul.f32 %v1570_v28, %v1807_v43 }
  0xec   : > { %v471_v26 = vmul.f32 %v1572_v0, %v1810_v44 }
  0xed   : > { %1364 = vmatmul.mubr.msk.f32.gmra.mrb[28].mxu0 %vm279_vm0, %v469_v18 }
  0xee   : > { %1366 = vmatprep.mubr.msk.f32.mxu0 %vm279_vm0, %v470_v25 }
  0xf1   : > { %1367 = vmatmul.mubr.msk.f32.gmra.mrb[30].mxu0 %vm279_vm0, %v471_v26 }
 0x188   : > { %v1323_v33 = vpop.f32.mrb[0].mxu0 }
 0x189   : > { %1037 = vst [vmem:[%s1984_s10 + $0x8] sm:$0xff] %v1323_v33  ;;  %v636_v36 = vpop.f32.mrb[1].mxu0 }
 0x18a   : > { %1036 = vst [vmem:[%s1984_s10] sm:$0xff] %v636_v36  ;;  %1401 = vmatprep.mubr.f32.mxu0 %v636_v36 }
 0x18b   : > { %1402 = vmatmul.mubr.f32.vlgmr.msra.gmra.mrb[32].mxu0 %v1323_v33 }
 0x18c   : > { %v1326_v43 = vpop.f32.mrb[2].mxu0 }
 0x18d   : > { %1039 = vst [vmem:[%s1984_s10 + $0x18] sm:$0xff] %v1326_v43  ;;  %v646_v44 = vpop.f32.mrb[3].mxu0 }
 0x18e   : > { %1038 = vst [vmem:[%s1984_s10 + $0x10] sm:$0xff] %v646_v44  ;;  %1404 = vmatprep.mubr.f32.mxu0 %v646_v44 }
 0x18f   : > { %1405 = vmatmul.mubr.f32.gmra.mrb[34].mxu0 %v1326_v43 }
 0x190   : > { %v1329_v49 = vpop.f32.mrb[4].mxu0 }
 0x191   : > { %1041 = vst [vmem:[%s1984_s10 + $0x28] sm:$0xff] %v1329_v49  ;;  %v656_v29 = vpop.f32.mrb[5].mxu0 }
 0x192   : > { %1040 = vst [vmem:[%s1984_s10 + $0x20] sm:$0xff] %v656_v29  ;;  %1407 = vmatprep.mubr.f32.mxu0 %v656_v29 }
 0x193   : > { %1408 = vmatmul.mubr.f32.gmra.mrb[36].mxu0 %v1329_v49 }
 0x194   : > { %v1332_v50 = vpop.f32.mrb[6].mxu0 }
 0x195   : > { %1043 = vst [vmem:[%s1984_s10 + $0x38] sm:$0xff] %v1332_v50  ;;  %v666_v51 = vpop.f32.mrb[7].mxu0 }
 0x196   : > { %1042 = vst [vmem:[%s1984_s10 + $0x30] sm:$0xff] %v666_v51  ;;  %1410 = vmatprep.mubr.f32.mxu1 %v666_v51 }
 0x197   : > { %1411 = vmatmul.mubr.f32.vlgmr.msra.gmra.mrb[0].mxu1 %v1332_v50 }
 0x198   : > { %v1335_v54 = vpop.f32.mrb[8].mxu0 }
 0x199   : > { %1045 = vst [vmem:[%s1984_s10 + $0x48] sm:$0xff] %v1335_v54  ;;  %v676_v19 = vpop.f32.mrb[9].mxu0 }
 0x19a   : > { %1044 = vst [vmem:[%s1984_s10 + $0x40] sm:$0xff] %v676_v19  ;;  %1413 = vmatprep.mubr.f32.mxu1 %v676_v19 }
 0x19b   : > { %1414 = vmatmul.mubr.f32.gmra.mrb[2].mxu1 %v1335_v54 }
 0x19c   : > { %v1338_v34 = vpop.f32.mrb[10].mxu0 }
 0x19d   : > { %1047 = vst [vmem:[%s1984_s10 + $0x58] sm:$0xff] %v1338_v34  ;;  %v686_v55 = vpop.f32.mrb[11].mxu0 }
 0x19e   : > { %1046 = vst [vmem:[%s1984_s10 + $0x50] sm:$0xff] %v686_v55  ;;  %1416 = vmatprep.mubr.f32.mxu1 %v686_v55 }
 0x19f   : > { %1417 = vmatmul.mubr.f32.gmra.mrb[4].mxu1 %v1338_v34 }
 0x1a0   : > { %v1341_v1 = vpop.f32.mrb[12].mxu0 }
 0x1a1   : > { %1049 = vst [vmem:[%s1984_s10 + $0x68] sm:$0xff] %v1341_v1  ;;  %v696_v35 = vpop.f32.mrb[13].mxu0 }
 0x1a2   : > { %1048 = vst [vmem:[%s1984_s10 + $0x60] sm:$0xff] %v696_v35  ;;  %1419 = vmatprep.mubr.f32.mxu1 %v696_v35 }
 0x1a3   : > { %1420 = vmatmul.mubr.f32.gmra.mrb[6].mxu1 %v1341_v1 }
 0x1a4   : > { %v1344_v2 = vpop.f32.mrb[14].mxu0 }
 0x1a5   : > { %1051 = vst [vmem:[%s1984_s10 + $0x78] sm:$0xff] %v1344_v2  ;;  %v706_v56 = vpop.f32.mrb[15].mxu0 }
 0x1a6   : > { %1050 = vst [vmem:[%s1984_s10 + $0x70] sm:$0xff] %v706_v56  ;;  %1422 = vmatprep.mubr.f32.mxu1 %v706_v56 }
 0x1a7   : > { %1423 = vmatmul.mubr.f32.gmra.mrb[8].mxu1 %v1344_v2 }
 0x1a8   : > { %v1347_v6 = vpop.f32.mrb[16].mxu0 }
 0x1a9   : > { %1053 = vst [vmem:[%s1984_s10 + $0x88] sm:$0xff] %v1347_v6  ;;  %v716_v24 = vpop.f32.mrb[17].mxu0 }
 0x1aa   : > { %1052 = vst [vmem:[%s1984_s10 + $0x80] sm:$0xff] %v716_v24  ;;  %1425 = vmatprep.mubr.f32.mxu1 %v716_v24 }
 0x1ab   : > { %1426 = vmatmul.mubr.f32.gmra.mrb[10].mxu1 %v1347_v6 }
 0x1ac   : > { %v1350_v40 = vpop.f32.mrb[18].mxu0 }
 0x1ad   : > { %1055 = vst [vmem:[%s1984_s10 + $0x98] sm:$0xff] %v1350_v40  ;;  %v726_v57 = vpop.f32.mrb[19].mxu0 }
 0x1ae   : > { %1054 = vst [vmem:[%s1984_s10 + $0x90] sm:$0xff] %v726_v57  ;;  %1428 = vmatprep.mubr.f32.mxu1 %v726_v57 }
 0x1af   : > { %1429 = vmatmul.mubr.f32.gmra.mrb[12].mxu1 %v1350_v40 }
 0x1b0   : > { %v1353_v59 = vpop.f32.mrb[20].mxu0 }
 0x1b1   : > { %1057 = vst [vmem:[%s1984_s10 + $0xa8] sm:$0xff] %v1353_v59  ;;  %v736_v41 = vpop.f32.mrb[21].mxu0 }
 0x1b2   : > { %1056 = vst [vmem:[%s1984_s10 + $0xa0] sm:$0xff] %v736_v41  ;;  %1431 = vmatprep.mubr.f32.mxu1 %v736_v41 }
 0x1b3   : > { %1432 = vmatmul.mubr.f32.gmra.mrb[14].mxu1 %v1353_v59 }
 0x1b4   : > { %v1356_v63 = vpop.f32.mrb[22].mxu0 }
 0x1b5   : > { %1059 = vst [vmem:[%s1984_s10 + $0xb8] sm:$0xff] %v1356_v63  ;;  %v746_v58 = vpop.f32.mrb[23].mxu0 }
 0x1b6   : > { %1058 = vst [vmem:[%s1984_s10 + $0xb0] sm:$0xff] %v746_v58  ;;  %1434 = vmatprep.mubr.f32.mxu1 %v746_v58 }
 0x1b7   : > { %1435 = vmatmul.mubr.f32.gmra.mrb[16].mxu1 %v1356_v63 }
 0x1b8   : > { %v1359_v8 = vpop.f32.mrb[24].mxu0 }
 0x1b9   : > { %1061 = vst [vmem:[%s1984_s10 + $0xc8] sm:$0xff] %v1359_v8  ;;  %v756_v31 = vpop.f32.mrb[25].mxu0 }
 0x1ba   : > { %1060 = vst [vmem:[%s1984_s10 + $0xc0] sm:$0xff] %v756_v31  ;;  %1437 = vmatprep.mubr.f32.mxu1 %v756_v31 }
 0x1bb   : > { %1438 = vmatmul.mubr.f32.gmra.mrb[18].mxu1 %v1359_v8 }
 0x1bc   : > { %v1362_v46 = vpop.f32.mrb[26].mxu0 }
 0x1bd   : > { %1063 = vst [vmem:[%s1984_s10 + $0xd8] sm:$0xff] %v1362_v46  ;;  %v766_v3 = vpop.f32.mrb[27].mxu0 }
 0x1be   : > { %1062 = vst [vmem:[%s1984_s10 + $0xd0] sm:$0xff] %v766_v3  ;;  %1440 = vmatprep.mubr.f32.mxu1 %v766_v3 }
 0x1bf   : > { %1441 = vmatmul.mubr.f32.gmra.mrb[20].mxu1 %v1362_v46 }
 0x1c0   : > { %v1365_v5 = vpop.f32.mrb[28].mxu0 }
 0x1c1   : > { %1065 = vst [vmem:[%s1984_s10 + $0xe8] sm:$0xff] %v1365_v5  ;;  %v776_v9 = vpop.f32.mrb[29].mxu0 }
 0x1c2   : > { %1064 = vst [vmem:[%s1984_s10 + $0xe0] sm:$0xff] %v776_v9  ;;  %1443 = vmatprep.mubr.f32.mxu1 %v776_v9 }
 0x1c3   : > { %1444 = vmatmul.mubr.f32.gmra.mrb[22].mxu1 %v1365_v5 }
 0x1c4   : > { %v1368_v11 = vpop.f32.mrb[30].mxu0 }
 0x1c5   : > { %1067 = vst [vmem:[%s1984_s10 + $0xf8] sm:$0xff] %v1368_v11  ;;  %v786_v47 = vpop.f32.mrb[31].mxu0 }
 0x1c6   : > { %1066 = vst [vmem:[%s1984_s10 + $0xf0] sm:$0xff] %v786_v47  ;;  %1446 = vmatprep.mubr.f32.mxu1 %v786_v47 }
 0x1c7   : > { %1447 = vmatmul.mubr.f32.gmra.mrb[24].mxu1 %v1368_v11 }
 0x25e   : > { %v1403_v13 = vpop.f32.mrb[32].mxu0 }
 0x25f   : > { %1069 = vst.msk [vmem:[%s2022_s13 + $0x8] sm:$0xff] %vm279_vm0, %v1403_v13  ;;  %v877_v14 = vpop.f32.mrb[33].mxu0 }
 0x260   : > { %1068 = vst.msk [vmem:[%s2022_s13] sm:$0xff] %vm279_vm0, %v877_v14 }
 0x262   : > { %v1406_v60 = vpop.f32.mrb[34].mxu0 }
 0x263   : > { %1071 = vst.msk [vmem:[%s2022_s13 + $0x18] sm:$0xff] %vm279_vm0, %v1406_v60  ;;  %v887_v52 = vpop.f32.mrb[35].mxu0 }
 0x264   : > { %1070 = vst.msk [vmem:[%s2022_s13 + $0x10] sm:$0xff] %vm279_vm0, %v887_v52 }
 0x266   : > { %v1409_v38 = vpop.f32.mrb[36].mxu0 }
 0x267   : > { %1073 = vst.msk [vmem:[%s2022_s13 + $0x28] sm:$0xff] %vm279_vm0, %v1409_v38  ;;  %v897_v16 = vpop.f32.mrb[37].mxu0 }
 0x268   : > { %1072 = vst.msk [vmem:[%s2022_s13 + $0x20] sm:$0xff] %vm279_vm0, %v897_v16 }
 0x26a   : > { %v1412_v20 = vpop.f32.mrb[0].mxu1 }
 0x26b   : > { %1075 = vst.msk [vmem:[%s2022_s13 + $0x38] sm:$0xff] %vm279_vm0, %v1412_v20  ;;  %v907_v53 = vpop.f32.mrb[1].mxu1 }
 0x26c   : > { %1074 = vst.msk [vmem:[%s2022_s13 + $0x30] sm:$0xff] %vm279_vm0, %v907_v53 }
 0x26e   : > { %v1415_v21 = vpop.f32.mrb[2].mxu1 }
 0x26f   : > { %1077 = vst.msk [vmem:[%s2022_s13 + $0x48] sm:$0xff] %vm279_vm0, %v1415_v21  ;;  %v917_v17 = vpop.f32.mrb[3].mxu1 }
 0x270   : > { %1076 = vst.msk [vmem:[%s2022_s13 + $0x40] sm:$0xff] %vm279_vm0, %v917_v17 }
 0x272   : > { %v1418_v27 = vpop.f32.mrb[4].mxu1 }
 0x273   : > { %1079 = vst.msk [vmem:[%s2022_s13 + $0x58] sm:$0xff] %vm279_vm0, %v1418_v27  ;;  %v927_v61 = vpop.f32.mrb[5].mxu1 }
 0x274   : > { %1078 = vst.msk [vmem:[%s2022_s13 + $0x50] sm:$0xff] %vm279_vm0, %v927_v61 }
 0x276   : > { %v1421_v30 = vpop.f32.mrb[6].mxu1 }
 0x277   : > { %1081 = vst.msk [vmem:[%s2022_s13 + $0x68] sm:$0xff] %vm279_vm0, %v1421_v30  ;;  %v937_v32 = vpop.f32.mrb[7].mxu1 }
 0x278   : > { %1080 = vst.msk [vmem:[%s2022_s13 + $0x60] sm:$0xff] %vm279_vm0, %v937_v32 }
 0x27a   : > { %v1424_v4 = vpop.f32.mrb[8].mxu1 }
 0x27b   : > { %1083 = vst.msk [vmem:[%s2022_s13 + $0x78] sm:$0xff] %vm279_vm0, %v1424_v4  ;;  %v947_v62 = vpop.f32.mrb[9].mxu1 }
 0x27c   : > { %1082 = vst.msk [vmem:[%s2022_s13 + $0x70] sm:$0xff] %vm279_vm0, %v947_v62 }
 0x27e   : > { %v1427_v22 = vpop.f32.mrb[10].mxu1 }
 0x27f   : > { %1085 = vst.msk [vmem:[%s2022_s13 + $0x88] sm:$0xff] %vm279_vm0, %v1427_v22  ;;  %v957_v37 = vpop.f32.mrb[11].mxu1 }
 0x280   : > { %1084 = vst.msk [vmem:[%s2022_s13 + $0x80] sm:$0xff] %vm279_vm0, %v957_v37 }
 0x282   : > { %v1430_v39 = vpop.f32.mrb[12].mxu1 }
 0x283   : > { %1087 = vst.msk [vmem:[%s2022_s13 + $0x98] sm:$0xff] %vm279_vm0, %v1430_v39  ;;  %v967_v7 = vpop.f32.mrb[13].mxu1 }
 0x284   : > { %1086 = vst.msk [vmem:[%s2022_s13 + $0x90] sm:$0xff] %vm279_vm0, %v967_v7 }
 0x286   : > { %v1433_v23 = vpop.f32.mrb[14].mxu1 }
 0x287   : > { %1089 = vst.msk [vmem:[%s2022_s13 + $0xa8] sm:$0xff] %vm279_vm0, %v1433_v23  ;;  %v977_v42 = vpop.f32.mrb[15].mxu1 }
 0x288   : > { %1088 = vst.msk [vmem:[%s2022_s13 + $0xa0] sm:$0xff] %vm279_vm0, %v977_v42 }
 0x28a   : > { %v1436_v10 = vpop.f32.mrb[16].mxu1 }
 0x28b   : > { %1091 = vst.msk [vmem:[%s2022_s13 + $0xb8] sm:$0xff] %vm279_vm0, %v1436_v10  ;;  %v987_v45 = vpop.f32.mrb[17].mxu1 }
 0x28c   : > { %1090 = vst.msk [vmem:[%s2022_s13 + $0xb0] sm:$0xff] %vm279_vm0, %v987_v45 }
 0x28e   : > { %v1439_v48 = vpop.f32.mrb[18].mxu1 }
 0x28f   : > { %1093 = vst.msk [vmem:[%s2022_s13 + $0xc8] sm:$0xff] %vm279_vm0, %v1439_v48  ;;  %v997_v15 = vpop.f32.mrb[19].mxu1 }
 0x290   : > { %1092 = vst.msk [vmem:[%s2022_s13 + $0xc0] sm:$0xff] %vm279_vm0, %v997_v15 }
 0x292   : > { %v1442_v12 = vpop.f32.mrb[20].mxu1 }
 0x293   : > { %1095 = vst.msk [vmem:[%s2022_s13 + $0xd8] sm:$0xff] %vm279_vm0, %v1442_v12  ;;  %v1007_v18 = vpop.f32.mrb[21].mxu1 }
 0x294   : > { %1094 = vst.msk [vmem:[%s2022_s13 + $0xd0] sm:$0xff] %vm279_vm0, %v1007_v18 }
 0x296   : > { %v1445_v28 = vpop.f32.mrb[22].mxu1 }
 0x297   : > { %1097 = vst.msk [vmem:[%s2022_s13 + $0xe8] sm:$0xff] %vm279_vm0, %v1445_v28  ;;  %v1017_v0 = vpop.f32.mrb[23].mxu1 }
 0x298   : > { %1096 = vst.msk [vmem:[%s2022_s13 + $0xe0] sm:$0xff] %vm279_vm0, %v1017_v0 }
 0x29a   : > { %v1448_v25 = vpop.f32.mrb[24].mxu1 }
 0x29b   : > { %1099 = vst.msk [vmem:[%s2022_s13 + $0xf8] sm:$0xff] %vm279_vm0, %v1448_v25  ;;  %v1027_v26 = vpop.f32.mrb[25].mxu1 }
 0x29c   : > { %1098 = vst.msk [vmem:[%s2022_s13 + $0xf0] sm:$0xff] %vm279_vm0, %v1027_v26 }
 0x29d PF: > { %s15_s15 = sadd.s32 1, %s1579_s15  }
 0x29e   : > { %p12_p4 = scmp.ge.s32.totalorder %s15_s15, 4  }
 0x2a0   :  { %14 = sbr.rel (!%p12_p4) target bundleno = 1 (0x1), region = 74 }

</bundles_post_ra>
